<compile_context>
chip_gen: v7x
topology: tpu7x:2x2x1
jax: 0.10.0
libtpu: 0.0.40
codegen_flags: <defaults>
</compile_context>

<pallas_src>
import jax
import jax.numpy as jnp
from jax.experimental import pallas as pl
from jax.experimental.pallas import tpu as pltpu

_LANE = 128              # lane width: last-dim tiles must be multiples of this (or full dim)
_ROW_ALIGN = 32          # covers sublane packing for f32 (8) / bf16 (16) / int8+fp8 (32)
_TILE_BYTES = 3 << 20    # per-tile budget; (in+out) x 2 double-buffers ~= 12 MiB total
_TINY_ELEMS = 64 * 1024  # below this, pallas_call launch overhead dwarfs the copy


def _copy_kernel(x_ref, o_ref):
    # Chomp lives entirely in the grid (it only covers the first L_out columns), so the
    # body is a plain lane-dense tile copy: wide unmasked stores on every full block.
    o_ref[...] = x_ref[...]


def _select_tiles(R, L_out, itemsize):
    """Pick (ROW_BLK, L_TILE) for the lane-dense tiled path (requires L_out >= 128).

    Goals (per perf review):
      * ~2-4 MiB-class tiles so the ~0.35 us per-grid-step overhead is amortized.
      * Take the whole 128-aligned time axis in one column block when it fits, so the
        column grid (nearly) collapses and stores stay wide/unmasked.
      * Keep >= 2 grid steps along a parallel axis so v7x's two TensorCores both work.
    """
    L_aligned = (L_out // _LANE) * _LANE

    # Lane (time) tile: whole aligned axis unless that starves the row dimension.
    l_tile = L_aligned
    if _TILE_BYTES // (l_tile * itemsize) < _ROW_ALIGN:
        l_tile = max(_LANE,
                     ((_TILE_BYTES // (_ROW_ALIGN * itemsize)) // _LANE) * _LANE)

    # Row (batch*channel) tile: biggest aligned slab under the per-tile budget.
    if R <= _ROW_ALIGN:
        row_blk = R  # block dim == full array dim is always legal
    else:
        max_rows = (_TILE_BYTES // (l_tile * itemsize) // _ROW_ALIGN) * _ROW_ALIGN
        row_blk = max(_ROW_ALIGN, min(R, 1024, max_rows))
        # Don't let tile growth collapse the whole grid to one step (v7x: 2 TCs).
        if pl.cdiv(R, row_blk) * pl.cdiv(L_out, l_tile) < 2 and R >= 2 * _ROW_ALIGN:
            row_blk = ((pl.cdiv(R, 2) + _ROW_ALIGN - 1) // _ROW_ALIGN) * _ROW_ALIGN
    return row_blk, l_tile


def chomp1d(x: jax.Array, chomp_size: int) -> jax.Array:
    """Pallas equivalent of Chomp1d(chomp_size).forward(x) for x of shape (B, C, L)."""
    B, C, L = x.shape
    # chomp_size == 0 is degenerate in PyTorch too (x[:, :, :-0] is empty); reject it.
    assert 0 < chomp_size < L, "chomp_size must be in (0, L)"
    L_out = L - chomp_size

    # Tiny / sub-lane-width outputs: skip Pallas. Launch + pipeline setup costs more
    # than the copy, and L_out < 128 would only produce masked partial stores; XLA's
    # slice copy is already near roofline at these sizes.
    if L_out < _LANE or B * C * L_out < _TINY_ELEMS:
        return x[:, :, :L_out]

    R = B * C
    x2 = x.reshape(R, L)
    itemsize = jnp.dtype(x.dtype).itemsize

    row_blk, l_tile = _select_tiles(R, L_out, itemsize)
    grid = (pl.cdiv(R, row_blk), pl.cdiv(L_out, l_tile))

    tile_bytes = row_blk * l_tile * itemsize
    # in + out, double-buffered, with headroom; explicit so v7x's 64 MiB part doesn't
    # inherit defaults tuned for 128 MiB chips (and v5e's 16 MiB scoped default is
    # raised only if actually needed). 32 MiB cap is safe on all three generations.
    vmem_limit = int(min(32 << 20, max(16 << 20, 8 * tile_bytes)))

    out2 = pl.pallas_call(
        _copy_kernel,
        out_shape=jax.ShapeDtypeStruct((R, L_out), x.dtype),
        grid_spec=pltpu.PrefetchScalarGridSpec(
            num_scalar_prefetch=0,
            grid=grid,
            in_specs=[pl.BlockSpec((row_blk, l_tile), lambda i, j: (i, j))],
            out_specs=pl.BlockSpec((row_blk, l_tile), lambda i, j: (i, j)),
            # NOTE: pipeline_mode=pl.Buffered(3) is a possible few-% win here but is
            # only taken after a sweep confirms it (review guidance); default 2 kept.
        ),
        compiler_params=pltpu.CompilerParams(
            # Both axes independent -> shard across both TensorCores on v7x.
            dimension_semantics=("parallel", "parallel"),
            vmem_limit_bytes=vmem_limit,
        ),
        cost_estimate=pl.CostEstimate(
            flops=0,
            transcendentals=0,
            # Tiled path reads exactly the region it writes (plus a negligible ragged
            # tail over-read): 2 * R * L_out bytes of HBM traffic.
            bytes_accessed=2 * R * L_out * itemsize,
        ),
    )(x2)

    return out2.reshape(B, C, L_out)


if __name__ == "__main__":
    key = jax.random.PRNGKey(0)

    # 1) Small module-scale shape (B, C, L): takes the XLA-slice fast path (by design).
    B, C, L, chomp = 2, 4, 16, 3
    x = jax.random.normal(key, (B, C, L), dtype=jnp.float32)
    out = jax.block_until_ready(chomp1d(x, chomp))
    assert out.shape == (B, C, L - chomp)
    assert out.dtype == x.dtype
    assert jnp.array_equal(out, x[:, :, :-chomp])

    # 2) Pallas tiled path, 128-aligned time axis: column grid collapses to one block,
    #    row axis split into >=2 parallel blocks.
    B2, C2, L2, chomp2 = 2, 256, 1152, 128          # R=512, L_out=1024
    x2 = jax.random.normal(jax.random.PRNGKey(1), (B2, C2, L2), dtype=jnp.float32)
    out2 = jax.block_until_ready(chomp1d(x2, chomp2))
    assert out2.shape == (B2, C2, L2 - chomp2)
    assert jnp.array_equal(out2, x2[:, :, :-chomp2])

    # 3) Pallas tiled path with a ragged (non-128-multiple) time tail: exercises the
    #    masked writeback of the final column block.
    B3, C3, L3, chomp3 = 2, 128, 300, 30            # R=256, L_out=270
    x3 = jax.random.normal(jax.random.PRNGKey(2), (B3, C3, L3), dtype=jnp.float32)
    out3 = jax.block_until_ready(chomp1d(x3, chomp3))
    assert out3.shape == (B3, C3, L3 - chomp3)
    assert jnp.array_equal(out3, x3[:, :, :-chomp3])

    print("KERNEL_OK")
</pallas_src>

<mosaic_0001>
module attributes {stable_mosaic.version = 11 : i64} {
  func.func @_copy_kernel(%arg0: i32, %arg1: i32, %arg2: memref<256x1024xf32, #tpu.memory_space<vmem>>, %arg3: memref<256x1024xf32, #tpu.memory_space<vmem>>) attributes {dimension_semantics = [#tpu.dimension_semantics<parallel>, #tpu.dimension_semantics<parallel>], iteration_bounds = array<i64: 2, 1>, scalar_prefetch = 0 : i64, scratch_operands = 0 : i64, tpu.core_type = #tpu.core_type<tc>, window_params = [{transform_indices = @transform_0, window_bounds = array<i64: 256, 1024>}, {transform_indices = @transform_1, window_bounds = array<i64: 256, 1024>}]} {
    %c0 = arith.constant 0 : index
    %c0_0 = arith.constant 0 : index
    %0 = vector.load %arg2[%c0, %c0_0] : memref<256x1024xf32, #tpu.memory_space<vmem>>, vector<256x1024xf32>
    %c0_1 = arith.constant 0 : index
    %c0_2 = arith.constant 0 : index
    %1 = vector.load %arg3[%c0_1, %c0_2] : memref<256x1024xf32, #tpu.memory_space<vmem>>, vector<256x1024xf32>
    tpu.vector_store %arg3[%c0_1, %c0_2], %0 {strides = array<i32>} : memref<256x1024xf32, #tpu.memory_space<vmem>>, vector<256x1024xf32>,
    return
  }
  func.func @transform_0(%arg0: i32, %arg1: i32) -> (i32, i32) {
    %c0_i32 = arith.constant 0 : i32
    return %arg0, %arg1 : i32, i32
  }
  func.func @transform_1(%arg0: i32, %arg1: i32) -> (i32, i32) {
    %c0_i32 = arith.constant 0 : i32
    return %arg0, %arg1 : i32, i32
  }
}

</mosaic_0001>

<bundles_post_ra>
// kernel: tpu_custom_call.1
= control target key start
LH: loop header
LB: loop body
LE: loop exit
PB: predicated region body
PF: predicated region fallthrough
CT: control target
= control target key end

     0   :  { %6 = vsyncpa [#allocation3], 0  ;;  %s1693_s0 = inlined_call_operand.hbm [shape: f32[512,1152], index: 0, kind: input, shape index: {}]   ;;  %s1694_s1 = inlined_call_operand.hbm [shape: f32[512,1024], index: 1, kind: output, shape index: {}]  }
   0x1   :  { %8 = vsyncpa [#allocation3 + $0x1], 0 }
   0x2   :  { %9 = vsyncpa [#allocation4], 0 }
   0x3   :  { %11 = vsyncpa [#allocation4 + $0x1], 0  ;;  %s1003_s6 = smov 0   ;;  %s1005_s7 = smov 0  }
   0x4   :  { %s1007_s8 = smov 0   ;;  %s1009_s9 = smov 0  }
   0x5   :  { %s1011_s10 = smov 0   ;;  %s1013_s11 = smov 0  }
   0x6 LB: > { %s785_s12 = sadd.s32 4294967295, %s984_s11   ;;  %s786_s13 = sadd.s32 4294967294, %s984_s11   ;;  %s984_s11 = sphi %s1013_s11, %s17_s11   ;;  %s980_s10 = sphi %s1011_s10, %s1708_s10   ;;  %s976_s9 = sphi %s1009_s9, %s1707_s9   ;;  %s972_s8 = sphi %s1007_s8, %s1706_s8   ;;  %s968_s7 = sphi %s1005_s7, %s1705_s7   ;;  %s964_s6 = sphi %s1003_s6, %s1704_s6  }
   0x7   : > { %s29_s14 = sadd.s32 1, %s980_s10  ;;  %s38_s15 = sadd.s32 1, %s972_s8 }
   0x8   : > { %p31_p0 = scmp.ge.s32.totalorder %s29_s14, 2  ;;  %p45_p1 = scmp.ne.s32.totalorder %s972_s8, %s968_s7 }
   0x9   : > { %p46_p2 = scmp.eq.s32.totalorder %s984_s11, 0  ;;  %p51_p3 = scmp.ne.s32.totalorder %s968_s7, %s964_s6 }
   0xa   : > { %s1710_s14 = smov (%p31_p0, %s29_s14), 0  ;;  %p52_p5 = scmp.eq.s32.totalorder %s785_s12, 0 }
   0xb   : > { %p1044_p4 = por %p46_p2, %p45_p1  ;;  %s33_s17 = ssub.s32 %s980_s10, %s1710_s14 }
   0xc   : > { %p77_p6 = scmp.eq.s32.totalorder %s785_s12, 1  ;;  %p36_p7 = scmp.eq.s32.totalorder %s33_s17, 0 }
   0xd   : > { %p1050_p8 = por %p52_p5, %p51_p3  ;;  %p83_p10 = scmp.eq.s32.totalorder %s786_s13, 1 }
   0xe   : > { %p1054_p9 = por %p77_p6, %p45_p1  ;;  %p817_p13 = scmp.lt.s32.totalorder %s984_s11, 2 }
   0xf   : > { %s1059_s20 = scalar_select %p36_p7, %s972_s8, %s38_s15  }
  0x10   : > { %s1698_s19 = scalar_select %p1054_p9, 1, 0 }
  0x11   : > { %p1061_p11 = por %p83_p10, %p51_p3  ;;  %s103_s22 = sand.u32 1, %s972_s8  }
  0x12   : > { %s789_s23 = sshll.u32 %s103_s22, 11  ;;  %s804_s24 = smul.u32 36864, %s980_s10 }
  0x13   : > { %s1699_s21 = scalar_select %p1061_p11, 1, 0 }
  0x14   : > { %s107_s25 = scalar_lea.vmem [#allocation2], %s789_s23  ;;  %p1071_p0 = pnand %p817_p13, %p1044_p4 }
  0x15   : > { %s124_s26 = sshll.u32 %s107_s25, 4  ;;  %s1078_s30 = scalar_lea.hbm %s1693_s0, %s804_s24  ;;  %s1080_s26 = int_to_ptr.vmem [resolvable:$true] %s124_s26 }
  0x16   : > { %s1082_s2 = scalar_lea.sflag [#allocation3], %s103_s22  ;;  %s872_s3 = scalar_lea.hbm %s1078_s30, 32768 }
  0x17   : > { %p873_p1 = scmp.ne.s32.totalorder %s1078_s30, %s872_s3  ;;  %p874_p2 = pneg %p1071_p0 }
  0x18   : > { %s877_s12 = scalar_lea.hbm %s1693_s0, 73728  ;;  %p878_p5 = scmp.lt.u32.totalorder %s1078_s30, %s1693_s0 }
  0x19   : > { %p875_p3 = pnand %p874_p2, %p873_p1  ;;  %p879_p6 = scmp.lt.u32.totalorder %s877_s12, %s872_s3 }
  0x1a   : > { %p881_p10 = scmp.lt.u32.totalorder %s872_s3, %s1078_s30 }
  0x1b   : > { %p876_p4 = pneg %p875_p3  ;;  %p880_p7 = por %p879_p6, %p878_p5 }
  0x1d   : > { %p882_p13 = por %p881_p10, %p880_p7 }
  0x1f   : > { %p883_p12 = pnand %p882_p13, %p876_p4 }
  0x21   : > { %886 = shalt.err (!%p883_p12)
}
  0x22   : > { %s887_s16 = scalar_lea.vmem %s1080_s26, 32768  ;;  %s986_s17 = smov [#allocation2]  }
  0x23   : > { %p888_p1 = scmp.ne.s32.totalorder %s1080_s26, %s887_s16  ;;  %s892_s22 = sshll.u32 %s986_s17, 4  ;;  %s893_s22 = int_to_ptr.vmem [resolvable:$false] %s892_s22 }
  0x24   : > { %s894_s23 = scalar_lea.vmem %s893_s22, 65536  ;;  %p895_p9 = scmp.lt.s32.totalorder %s1080_s26, %s893_s22 }
  0x25   : > { %p890_p3 = pnand %p888_p1, %p874_p2  ;;  %p896_p5 = scmp.lt.s32.totalorder %s894_s23, %s887_s16 }
  0x27   : > { %p891_p11 = pneg %p890_p3  ;;  %p897_p6 = por %p896_p5, %p895_p9 }
  0x29   : > { %p898_p7 = pnand %p897_p6, %p891_p11 }
  0x2b   : > { %901 = shalt.err (!%p898_p7)
}
  0x2c   : > { %s987_s24 = smov 1152   ;;  %s988_s25 = smov 1024  }
  0x2d   : > { %s989_s28 = smov 64   ;;  %p793_p12 = scmp.ge.s32.totalorder %s984_s11, 1 }
  0x2e   : > { %812 = dma.hbm_to_vmem [thread:$0]  (!%p1071_p0), %s1078_s30, 32768, %s1080_s26, %s1082_s2, %s987_s24, %s988_s25, %s989_s28  }
  0x2f   : > { %p132_p2 = scmp.lt.s32.totalorder %s984_s11, 3 }
  0x31   : > { %p133_p4 = pnand %p793_p12, %p132_p2 }
  0x32   : > { %s1113_s29 = sand.u32 (!%p133_p4), 1, %s968_s7  }
  0x33   : > { %136 = sbr.rel (%p133_p4) target bundleno = 202 (0xca), region = 24  ;;  %s794_s3 = sshll.u32 (!%p133_p4), %s1113_s29, 11 }
  0x34   : > { %s139_s4 = scalar_lea.sflag (!%p133_p4), [#allocation3], %s1113_s29  ;;  %s1117_s5 = scalar_lea.vmem (!%p133_p4), [#allocation2], %s794_s3 }
  0x3a   : > { %955 = dma.done.wait (%p1050_p8), %s139_s4, 32768  }
  0x3b   : > { %957 = vsyncadd (%p1050_p8), %s139_s4, 4294934528  ;;  %v169_v0 = vld [vmem:[%s1117_s5] sm:$0xff]  ;;  %v170_v1 = vld [vmem:[%s1117_s5 + $0x8] sm:$0xff]  ;;  %s1126_s26 = scalar_lea.vmem [#allocation5], %s794_s3  ;;  %s803_s18 = sshll.u32 %s976_s9, 15 }
  0x3c   : > { %v171_v2 = vld [vmem:[%s1117_s5 + $0x10] sm:$0xff]  ;;  %425 = vst [vmem:[%s1126_s26] sm:$0xff] %v169_v0  ;;  %426 = vst [vmem:[%s1126_s26 + $0x8] sm:$0xff] %v170_v1  ;;  %v172_v3 = vld [vmem:[%s1117_s5 + $0x18] sm:$0xff]  ;;  %s698_s27 = sshll.u32 %s1126_s26, 4  ;;  %s1631_s2 = scalar_lea.hbm %s1694_s1, %s803_s18  ;;  %s1633_s27 = int_to_ptr.vmem [resolvable:$true] %s698_s27 }
  0x3d   : > { %427 = vst [vmem:[%s1126_s26 + $0x10] sm:$0xff] %v171_v2  ;;  %v173_v4 = vld [vmem:[%s1117_s5 + $0x20] sm:$0xff]  ;;  %v174_v5 = vld [vmem:[%s1117_s5 + $0x28] sm:$0xff]  ;;  %428 = vst [vmem:[%s1126_s26 + $0x18] sm:$0xff] %v172_v3  ;;  %s682_s12 = scalar_lea.sflag [#allocation4], %s1113_s29  ;;  %s902_s13 = scalar_lea.vmem %s1633_s27, 32768 }
  0x3e   : > { %429 = vst [vmem:[%s1126_s26 + $0x20] sm:$0xff] %v173_v4  ;;  %430 = vst [vmem:[%s1126_s26 + $0x28] sm:$0xff] %v174_v5  ;;  %v175_v6 = vld [vmem:[%s1117_s5 + $0x30] sm:$0xff]  ;;  %v176_v7 = vld [vmem:[%s1117_s5 + $0x38] sm:$0xff]  ;;  %p903_p8 = scmp.ne.s32.totalorder %s1633_s27, %s902_s13  ;;  %p1701_p9 = scmp.ne.s32.totalorder %s1698_s19, 0 }
  0x3f   : > { %v177_v8 = vld [vmem:[%s1117_s5 + $0x40] sm:$0xff]  ;;  %431 = vst [vmem:[%s1126_s26 + $0x30] sm:$0xff] %v175_v6  ;;  %432 = vst [vmem:[%s1126_s26 + $0x38] sm:$0xff] %v176_v7  ;;  %v178_v9 = vld [vmem:[%s1117_s5 + $0x48] sm:$0xff]  ;;  %s990_s15 = smov [#allocation5]  }
  0x40   : > { %433 = vst [vmem:[%s1126_s26 + $0x40] sm:$0xff] %v177_v8  ;;  %v179_v10 = vld [vmem:[%s1117_s5 + $0x50] sm:$0xff]  ;;  %v180_v11 = vld [vmem:[%s1117_s5 + $0x58] sm:$0xff]  ;;  %434 = vst [vmem:[%s1126_s26 + $0x48] sm:$0xff] %v178_v9  ;;  %p904_p11 = pnand %p903_p8, %p1701_p9  ;;  %s906_s16 = sshll.u32 %s990_s15, 4  ;;  %s907_s16 = int_to_ptr.vmem [resolvable:$false] %s906_s16 }
  0x41   : > { %435 = vst [vmem:[%s1126_s26 + $0x50] sm:$0xff] %v179_v10  ;;  %436 = vst [vmem:[%s1126_s26 + $0x58] sm:$0xff] %v180_v11  ;;  %v181_v12 = vld [vmem:[%s1117_s5 + $0x60] sm:$0xff]  ;;  %v182_v13 = vld [vmem:[%s1117_s5 + $0x68] sm:$0xff]  ;;  %s908_s17 = scalar_lea.vmem %s907_s16, 65536  ;;  %p909_p10 = scmp.lt.s32.totalorder %s1633_s27, %s907_s16 }
  0x42   : > { %v183_v14 = vld [vmem:[%s1117_s5 + $0x70] sm:$0xff]  ;;  %437 = vst [vmem:[%s1126_s26 + $0x60] sm:$0xff] %v181_v12  ;;  %438 = vst [vmem:[%s1126_s26 + $0x68] sm:$0xff] %v182_v13  ;;  %v184_v15 = vld [vmem:[%s1117_s5 + $0x78] sm:$0xff]  ;;  %p905_p0 = pneg %p904_p11  ;;  %p910_p13 = scmp.lt.s32.totalorder %s908_s17, %s902_s13 }
  0x43   : > { %439 = vst [vmem:[%s1126_s26 + $0x70] sm:$0xff] %v183_v14  ;;  %v185_v16 = vld [vmem:[%s1117_s5 + $0x80] sm:$0xff]  ;;  %v186_v17 = vld [vmem:[%s1117_s5 + $0x88] sm:$0xff]  ;;  %440 = vst [vmem:[%s1126_s26 + $0x78] sm:$0xff] %v184_v15 }
  0x44   : > { %441 = vst [vmem:[%s1126_s26 + $0x80] sm:$0xff] %v185_v16  ;;  %442 = vst [vmem:[%s1126_s26 + $0x88] sm:$0xff] %v186_v17  ;;  %v187_v18 = vld [vmem:[%s1117_s5 + $0x90] sm:$0xff]  ;;  %v188_v19 = vld [vmem:[%s1117_s5 + $0x98] sm:$0xff]  ;;  %p911_p1 = por %p910_p13, %p909_p10 }
  0x45   : > { %v189_v20 = vld [vmem:[%s1117_s5 + $0xa0] sm:$0xff]  ;;  %443 = vst [vmem:[%s1126_s26 + $0x90] sm:$0xff] %v187_v18  ;;  %444 = vst [vmem:[%s1126_s26 + $0x98] sm:$0xff] %v188_v19  ;;  %v190_v21 = vld [vmem:[%s1117_s5 + $0xa8] sm:$0xff] }
  0x46   : > { %445 = vst [vmem:[%s1126_s26 + $0xa0] sm:$0xff] %v189_v20  ;;  %v191_v22 = vld [vmem:[%s1117_s5 + $0xb0] sm:$0xff]  ;;  %v192_v23 = vld [vmem:[%s1117_s5 + $0xb8] sm:$0xff]  ;;  %446 = vst [vmem:[%s1126_s26 + $0xa8] sm:$0xff] %v190_v21  ;;  %p912_p3 = pnand %p911_p1, %p905_p0 }
  0x47   : > { %447 = vst [vmem:[%s1126_s26 + $0xb0] sm:$0xff] %v191_v22  ;;  %448 = vst [vmem:[%s1126_s26 + $0xb8] sm:$0xff] %v192_v23  ;;  %v193_v24 = vld [vmem:[%s1117_s5 + $0xc0] sm:$0xff]  ;;  %v194_v25 = vld [vmem:[%s1117_s5 + $0xc8] sm:$0xff] }
  0x48   : > { %v195_v26 = vld [vmem:[%s1117_s5 + $0xd0] sm:$0xff]  ;;  %449 = vst [vmem:[%s1126_s26 + $0xc0] sm:$0xff] %v193_v24  ;;  %450 = vst [vmem:[%s1126_s26 + $0xc8] sm:$0xff] %v194_v25  ;;  %v196_v27 = vld [vmem:[%s1117_s5 + $0xd8] sm:$0xff] }
  0x49   : > { %451 = vst [vmem:[%s1126_s26 + $0xd0] sm:$0xff] %v195_v26  ;;  %v197_v28 = vld [vmem:[%s1117_s5 + $0xe0] sm:$0xff]  ;;  %v198_v29 = vld [vmem:[%s1117_s5 + $0xe8] sm:$0xff]  ;;  %452 = vst [vmem:[%s1126_s26 + $0xd8] sm:$0xff] %v196_v27 }
  0x4a   : > { %453 = vst [vmem:[%s1126_s26 + $0xe0] sm:$0xff] %v197_v28  ;;  %454 = vst [vmem:[%s1126_s26 + $0xe8] sm:$0xff] %v198_v29  ;;  %v199_v30 = vld [vmem:[%s1117_s5 + $0xf0] sm:$0xff]  ;;  %v200_v31 = vld [vmem:[%s1117_s5 + $0xf8] sm:$0xff] }
  0x4b   : > { %v201_v32 = vld [vmem:[%s1117_s5 + $0x100] sm:$0xff]  ;;  %455 = vst [vmem:[%s1126_s26 + $0xf0] sm:$0xff] %v199_v30  ;;  %456 = vst [vmem:[%s1126_s26 + $0xf8] sm:$0xff] %v200_v31  ;;  %v202_v33 = vld [vmem:[%s1117_s5 + $0x108] sm:$0xff] }
  0x4c   : > { %457 = vst [vmem:[%s1126_s26 + $0x100] sm:$0xff] %v201_v32  ;;  %v203_v34 = vld [vmem:[%s1117_s5 + $0x110] sm:$0xff]  ;;  %v204_v35 = vld [vmem:[%s1117_s5 + $0x118] sm:$0xff]  ;;  %458 = vst [vmem:[%s1126_s26 + $0x108] sm:$0xff] %v202_v33 }
  0x4d   : > { %459 = vst [vmem:[%s1126_s26 + $0x110] sm:$0xff] %v203_v34  ;;  %460 = vst [vmem:[%s1126_s26 + $0x118] sm:$0xff] %v204_v35  ;;  %v205_v36 = vld [vmem:[%s1117_s5 + $0x120] sm:$0xff]  ;;  %v206_v37 = vld [vmem:[%s1117_s5 + $0x128] sm:$0xff] }
  0x4e   : > { %v207_v38 = vld [vmem:[%s1117_s5 + $0x130] sm:$0xff]  ;;  %461 = vst [vmem:[%s1126_s26 + $0x120] sm:$0xff] %v205_v36  ;;  %462 = vst [vmem:[%s1126_s26 + $0x128] sm:$0xff] %v206_v37  ;;  %v208_v39 = vld [vmem:[%s1117_s5 + $0x138] sm:$0xff] }
  0x4f   : > { %463 = vst [vmem:[%s1126_s26 + $0x130] sm:$0xff] %v207_v38  ;;  %v209_v40 = vld [vmem:[%s1117_s5 + $0x140] sm:$0xff]  ;;  %v210_v41 = vld [vmem:[%s1117_s5 + $0x148] sm:$0xff]  ;;  %464 = vst [vmem:[%s1126_s26 + $0x138] sm:$0xff] %v208_v39 }
  0x50   : > { %465 = vst [vmem:[%s1126_s26 + $0x140] sm:$0xff] %v209_v40  ;;  %466 = vst [vmem:[%s1126_s26 + $0x148] sm:$0xff] %v210_v41  ;;  %v211_v42 = vld [vmem:[%s1117_s5 + $0x150] sm:$0xff]  ;;  %v212_v43 = vld [vmem:[%s1117_s5 + $0x158] sm:$0xff] }
  0x51   : > { %v213_v44 = vld [vmem:[%s1117_s5 + $0x160] sm:$0xff]  ;;  %467 = vst [vmem:[%s1126_s26 + $0x150] sm:$0xff] %v211_v42  ;;  %468 = vst [vmem:[%s1126_s26 + $0x158] sm:$0xff] %v212_v43  ;;  %v214_v45 = vld [vmem:[%s1117_s5 + $0x168] sm:$0xff] }
  0x52   : > { %469 = vst [vmem:[%s1126_s26 + $0x160] sm:$0xff] %v213_v44  ;;  %v215_v46 = vld [vmem:[%s1117_s5 + $0x170] sm:$0xff]  ;;  %v216_v47 = vld [vmem:[%s1117_s5 + $0x178] sm:$0xff]  ;;  %470 = vst [vmem:[%s1126_s26 + $0x168] sm:$0xff] %v214_v45 }
  0x53   : > { %471 = vst [vmem:[%s1126_s26 + $0x170] sm:$0xff] %v215_v46  ;;  %472 = vst [vmem:[%s1126_s26 + $0x178] sm:$0xff] %v216_v47  ;;  %v217_v48 = vld [vmem:[%s1117_s5 + $0x180] sm:$0xff]  ;;  %v218_v49 = vld [vmem:[%s1117_s5 + $0x188] sm:$0xff] }
  0x54   : > { %v219_v50 = vld [vmem:[%s1117_s5 + $0x190] sm:$0xff]  ;;  %473 = vst [vmem:[%s1126_s26 + $0x180] sm:$0xff] %v217_v48  ;;  %474 = vst [vmem:[%s1126_s26 + $0x188] sm:$0xff] %v218_v49  ;;  %v220_v51 = vld [vmem:[%s1117_s5 + $0x198] sm:$0xff] }
  0x55   : > { %475 = vst [vmem:[%s1126_s26 + $0x190] sm:$0xff] %v219_v50  ;;  %v221_v52 = vld [vmem:[%s1117_s5 + $0x1a0] sm:$0xff]  ;;  %v222_v53 = vld [vmem:[%s1117_s5 + $0x1a8] sm:$0xff]  ;;  %476 = vst [vmem:[%s1126_s26 + $0x198] sm:$0xff] %v220_v51 }
  0x56   : > { %477 = vst [vmem:[%s1126_s26 + $0x1a0] sm:$0xff] %v221_v52  ;;  %478 = vst [vmem:[%s1126_s26 + $0x1a8] sm:$0xff] %v222_v53  ;;  %v223_v54 = vld [vmem:[%s1117_s5 + $0x1b0] sm:$0xff]  ;;  %v224_v55 = vld [vmem:[%s1117_s5 + $0x1b8] sm:$0xff] }
  0x57   : > { %v225_v56 = vld [vmem:[%s1117_s5 + $0x1c0] sm:$0xff]  ;;  %479 = vst [vmem:[%s1126_s26 + $0x1b0] sm:$0xff] %v223_v54  ;;  %480 = vst [vmem:[%s1126_s26 + $0x1b8] sm:$0xff] %v224_v55  ;;  %v226_v57 = vld [vmem:[%s1117_s5 + $0x1c8] sm:$0xff] }
  0x58   : > { %481 = vst [vmem:[%s1126_s26 + $0x1c0] sm:$0xff] %v225_v56  ;;  %v227_v58 = vld [vmem:[%s1117_s5 + $0x1d0] sm:$0xff]  ;;  %v228_v59 = vld [vmem:[%s1117_s5 + $0x1d8] sm:$0xff]  ;;  %482 = vst [vmem:[%s1126_s26 + $0x1c8] sm:$0xff] %v226_v57 }
  0x59   : > { %483 = vst [vmem:[%s1126_s26 + $0x1d0] sm:$0xff] %v227_v58  ;;  %484 = vst [vmem:[%s1126_s26 + $0x1d8] sm:$0xff] %v228_v59  ;;  %v229_v60 = vld [vmem:[%s1117_s5 + $0x1e0] sm:$0xff]  ;;  %v230_v61 = vld [vmem:[%s1117_s5 + $0x1e8] sm:$0xff] }
  0x5a   : > { %v231_v62 = vld [vmem:[%s1117_s5 + $0x1f0] sm:$0xff]  ;;  %485 = vst [vmem:[%s1126_s26 + $0x1e0] sm:$0xff] %v229_v60  ;;  %486 = vst [vmem:[%s1126_s26 + $0x1e8] sm:$0xff] %v230_v61  ;;  %v232_v63 = vld [vmem:[%s1117_s5 + $0x1f8] sm:$0xff] }
  0x5b   : > { %487 = vst [vmem:[%s1126_s26 + $0x1f0] sm:$0xff] %v231_v62  ;;  %v233_v0 = vld [vmem:[%s1117_s5 + $0x200] sm:$0xff]  ;;  %v234_v1 = vld [vmem:[%s1117_s5 + $0x208] sm:$0xff]  ;;  %488 = vst [vmem:[%s1126_s26 + $0x1f8] sm:$0xff] %v232_v63 }
  0x5c   : > { %489 = vst [vmem:[%s1126_s26 + $0x200] sm:$0xff] %v233_v0  ;;  %490 = vst [vmem:[%s1126_s26 + $0x208] sm:$0xff] %v234_v1  ;;  %v235_v2 = vld [vmem:[%s1117_s5 + $0x210] sm:$0xff]  ;;  %v236_v3 = vld [vmem:[%s1117_s5 + $0x218] sm:$0xff] }
  0x5d   : > { %v237_v4 = vld [vmem:[%s1117_s5 + $0x220] sm:$0xff]  ;;  %491 = vst [vmem:[%s1126_s26 + $0x210] sm:$0xff] %v235_v2  ;;  %492 = vst [vmem:[%s1126_s26 + $0x218] sm:$0xff] %v236_v3  ;;  %v238_v5 = vld [vmem:[%s1117_s5 + $0x228] sm:$0xff] }
  0x5e   : > { %493 = vst [vmem:[%s1126_s26 + $0x220] sm:$0xff] %v237_v4  ;;  %v239_v6 = vld [vmem:[%s1117_s5 + $0x230] sm:$0xff]  ;;  %v240_v7 = vld [vmem:[%s1117_s5 + $0x238] sm:$0xff]  ;;  %494 = vst [vmem:[%s1126_s26 + $0x228] sm:$0xff] %v238_v5 }
  0x5f   : > { %495 = vst [vmem:[%s1126_s26 + $0x230] sm:$0xff] %v239_v6  ;;  %496 = vst [vmem:[%s1126_s26 + $0x238] sm:$0xff] %v240_v7  ;;  %v241_v8 = vld [vmem:[%s1117_s5 + $0x240] sm:$0xff]  ;;  %v242_v9 = vld [vmem:[%s1117_s5 + $0x248] sm:$0xff] }
  0x60   : > { %v243_v10 = vld [vmem:[%s1117_s5 + $0x250] sm:$0xff]  ;;  %497 = vst [vmem:[%s1126_s26 + $0x240] sm:$0xff] %v241_v8  ;;  %498 = vst [vmem:[%s1126_s26 + $0x248] sm:$0xff] %v242_v9  ;;  %v244_v11 = vld [vmem:[%s1117_s5 + $0x258] sm:$0xff] }
  0x61   : > { %499 = vst [vmem:[%s1126_s26 + $0x250] sm:$0xff] %v243_v10  ;;  %v245_v12 = vld [vmem:[%s1117_s5 + $0x260] sm:$0xff]  ;;  %v246_v13 = vld [vmem:[%s1117_s5 + $0x268] sm:$0xff]  ;;  %500 = vst [vmem:[%s1126_s26 + $0x258] sm:$0xff] %v244_v11 }
  0x62   : > { %501 = vst [vmem:[%s1126_s26 + $0x260] sm:$0xff] %v245_v12  ;;  %502 = vst [vmem:[%s1126_s26 + $0x268] sm:$0xff] %v246_v13  ;;  %v247_v14 = vld [vmem:[%s1117_s5 + $0x270] sm:$0xff]  ;;  %v248_v15 = vld [vmem:[%s1117_s5 + $0x278] sm:$0xff] }
  0x63   : > { %v249_v16 = vld [vmem:[%s1117_s5 + $0x280] sm:$0xff]  ;;  %503 = vst [vmem:[%s1126_s26 + $0x270] sm:$0xff] %v247_v14  ;;  %504 = vst [vmem:[%s1126_s26 + $0x278] sm:$0xff] %v248_v15  ;;  %v250_v17 = vld [vmem:[%s1117_s5 + $0x288] sm:$0xff] }
  0x64   : > { %505 = vst [vmem:[%s1126_s26 + $0x280] sm:$0xff] %v249_v16  ;;  %v251_v18 = vld [vmem:[%s1117_s5 + $0x290] sm:$0xff]  ;;  %v252_v19 = vld [vmem:[%s1117_s5 + $0x298] sm:$0xff]  ;;  %506 = vst [vmem:[%s1126_s26 + $0x288] sm:$0xff] %v250_v17 }
  0x65   : > { %507 = vst [vmem:[%s1126_s26 + $0x290] sm:$0xff] %v251_v18  ;;  %508 = vst [vmem:[%s1126_s26 + $0x298] sm:$0xff] %v252_v19  ;;  %v253_v20 = vld [vmem:[%s1117_s5 + $0x2a0] sm:$0xff]  ;;  %v254_v21 = vld [vmem:[%s1117_s5 + $0x2a8] sm:$0xff] }
  0x66   : > { %v255_v22 = vld [vmem:[%s1117_s5 + $0x2b0] sm:$0xff]  ;;  %509 = vst [vmem:[%s1126_s26 + $0x2a0] sm:$0xff] %v253_v20  ;;  %510 = vst [vmem:[%s1126_s26 + $0x2a8] sm:$0xff] %v254_v21  ;;  %v256_v23 = vld [vmem:[%s1117_s5 + $0x2b8] sm:$0xff] }
  0x67   : > { %511 = vst [vmem:[%s1126_s26 + $0x2b0] sm:$0xff] %v255_v22  ;;  %v257_v24 = vld [vmem:[%s1117_s5 + $0x2c0] sm:$0xff]  ;;  %v258_v25 = vld [vmem:[%s1117_s5 + $0x2c8] sm:$0xff]  ;;  %512 = vst [vmem:[%s1126_s26 + $0x2b8] sm:$0xff] %v256_v23 }
  0x68   : > { %513 = vst [vmem:[%s1126_s26 + $0x2c0] sm:$0xff] %v257_v24  ;;  %514 = vst [vmem:[%s1126_s26 + $0x2c8] sm:$0xff] %v258_v25  ;;  %v259_v26 = vld [vmem:[%s1117_s5 + $0x2d0] sm:$0xff]  ;;  %v260_v27 = vld [vmem:[%s1117_s5 + $0x2d8] sm:$0xff] }
  0x69   : > { %v261_v28 = vld [vmem:[%s1117_s5 + $0x2e0] sm:$0xff]  ;;  %515 = vst [vmem:[%s1126_s26 + $0x2d0] sm:$0xff] %v259_v26  ;;  %516 = vst [vmem:[%s1126_s26 + $0x2d8] sm:$0xff] %v260_v27  ;;  %v262_v29 = vld [vmem:[%s1117_s5 + $0x2e8] sm:$0xff] }
  0x6a   : > { %517 = vst [vmem:[%s1126_s26 + $0x2e0] sm:$0xff] %v261_v28  ;;  %v263_v30 = vld [vmem:[%s1117_s5 + $0x2f0] sm:$0xff]  ;;  %v264_v31 = vld [vmem:[%s1117_s5 + $0x2f8] sm:$0xff]  ;;  %518 = vst [vmem:[%s1126_s26 + $0x2e8] sm:$0xff] %v262_v29 }
  0x6b   : > { %519 = vst [vmem:[%s1126_s26 + $0x2f0] sm:$0xff] %v263_v30  ;;  %520 = vst [vmem:[%s1126_s26 + $0x2f8] sm:$0xff] %v264_v31  ;;  %v265_v32 = vld [vmem:[%s1117_s5 + $0x300] sm:$0xff]  ;;  %v266_v33 = vld [vmem:[%s1117_s5 + $0x308] sm:$0xff] }
  0x6c   : > { %v267_v34 = vld [vmem:[%s1117_s5 + $0x310] sm:$0xff]  ;;  %521 = vst [vmem:[%s1126_s26 + $0x300] sm:$0xff] %v265_v32  ;;  %522 = vst [vmem:[%s1126_s26 + $0x308] sm:$0xff] %v266_v33  ;;  %v268_v35 = vld [vmem:[%s1117_s5 + $0x318] sm:$0xff] }
  0x6d   : > { %523 = vst [vmem:[%s1126_s26 + $0x310] sm:$0xff] %v267_v34  ;;  %v269_v36 = vld [vmem:[%s1117_s5 + $0x320] sm:$0xff]  ;;  %v270_v37 = vld [vmem:[%s1117_s5 + $0x328] sm:$0xff]  ;;  %524 = vst [vmem:[%s1126_s26 + $0x318] sm:$0xff] %v268_v35 }
  0x6e   : > { %525 = vst [vmem:[%s1126_s26 + $0x320] sm:$0xff] %v269_v36  ;;  %526 = vst [vmem:[%s1126_s26 + $0x328] sm:$0xff] %v270_v37  ;;  %v271_v38 = vld [vmem:[%s1117_s5 + $0x330] sm:$0xff]  ;;  %v272_v39 = vld [vmem:[%s1117_s5 + $0x338] sm:$0xff] }
  0x6f   : > { %v273_v40 = vld [vmem:[%s1117_s5 + $0x340] sm:$0xff]  ;;  %527 = vst [vmem:[%s1126_s26 + $0x330] sm:$0xff] %v271_v38  ;;  %528 = vst [vmem:[%s1126_s26 + $0x338] sm:$0xff] %v272_v39  ;;  %v274_v41 = vld [vmem:[%s1117_s5 + $0x348] sm:$0xff] }
  0x70   : > { %529 = vst [vmem:[%s1126_s26 + $0x340] sm:$0xff] %v273_v40  ;;  %v275_v42 = vld [vmem:[%s1117_s5 + $0x350] sm:$0xff]  ;;  %v276_v43 = vld [vmem:[%s1117_s5 + $0x358] sm:$0xff]  ;;  %530 = vst [vmem:[%s1126_s26 + $0x348] sm:$0xff] %v274_v41 }
  0x71   : > { %531 = vst [vmem:[%s1126_s26 + $0x350] sm:$0xff] %v275_v42  ;;  %532 = vst [vmem:[%s1126_s26 + $0x358] sm:$0xff] %v276_v43  ;;  %v277_v44 = vld [vmem:[%s1117_s5 + $0x360] sm:$0xff]  ;;  %v278_v45 = vld [vmem:[%s1117_s5 + $0x368] sm:$0xff] }
  0x72   : > { %v279_v46 = vld [vmem:[%s1117_s5 + $0x370] sm:$0xff]  ;;  %533 = vst [vmem:[%s1126_s26 + $0x360] sm:$0xff] %v277_v44  ;;  %534 = vst [vmem:[%s1126_s26 + $0x368] sm:$0xff] %v278_v45  ;;  %v280_v47 = vld [vmem:[%s1117_s5 + $0x378] sm:$0xff] }
  0x73   : > { %535 = vst [vmem:[%s1126_s26 + $0x370] sm:$0xff] %v279_v46  ;;  %v281_v48 = vld [vmem:[%s1117_s5 + $0x380] sm:$0xff]  ;;  %v282_v49 = vld [vmem:[%s1117_s5 + $0x388] sm:$0xff]  ;;  %536 = vst [vmem:[%s1126_s26 + $0x378] sm:$0xff] %v280_v47 }
  0x74   : > { %537 = vst [vmem:[%s1126_s26 + $0x380] sm:$0xff] %v281_v48  ;;  %538 = vst [vmem:[%s1126_s26 + $0x388] sm:$0xff] %v282_v49  ;;  %v283_v50 = vld [vmem:[%s1117_s5 + $0x390] sm:$0xff]  ;;  %v284_v51 = vld [vmem:[%s1117_s5 + $0x398] sm:$0xff] }
  0x75   : > { %v285_v52 = vld [vmem:[%s1117_s5 + $0x3a0] sm:$0xff]  ;;  %539 = vst [vmem:[%s1126_s26 + $0x390] sm:$0xff] %v283_v50  ;;  %540 = vst [vmem:[%s1126_s26 + $0x398] sm:$0xff] %v284_v51  ;;  %v286_v53 = vld [vmem:[%s1117_s5 + $0x3a8] sm:$0xff] }
  0x76   : > { %541 = vst [vmem:[%s1126_s26 + $0x3a0] sm:$0xff] %v285_v52  ;;  %v287_v54 = vld [vmem:[%s1117_s5 + $0x3b0] sm:$0xff]  ;;  %v288_v55 = vld [vmem:[%s1117_s5 + $0x3b8] sm:$0xff]  ;;  %542 = vst [vmem:[%s1126_s26 + $0x3a8] sm:$0xff] %v286_v53 }
  0x77   : > { %543 = vst [vmem:[%s1126_s26 + $0x3b0] sm:$0xff] %v287_v54  ;;  %544 = vst [vmem:[%s1126_s26 + $0x3b8] sm:$0xff] %v288_v55  ;;  %v289_v56 = vld [vmem:[%s1117_s5 + $0x3c0] sm:$0xff]  ;;  %v290_v57 = vld [vmem:[%s1117_s5 + $0x3c8] sm:$0xff] }
  0x78   : > { %v291_v58 = vld [vmem:[%s1117_s5 + $0x3d0] sm:$0xff]  ;;  %545 = vst [vmem:[%s1126_s26 + $0x3c0] sm:$0xff] %v289_v56  ;;  %546 = vst [vmem:[%s1126_s26 + $0x3c8] sm:$0xff] %v290_v57  ;;  %v292_v59 = vld [vmem:[%s1117_s5 + $0x3d8] sm:$0xff] }
  0x79   : > { %547 = vst [vmem:[%s1126_s26 + $0x3d0] sm:$0xff] %v291_v58  ;;  %v293_v60 = vld [vmem:[%s1117_s5 + $0x3e0] sm:$0xff]  ;;  %v294_v61 = vld [vmem:[%s1117_s5 + $0x3e8] sm:$0xff]  ;;  %548 = vst [vmem:[%s1126_s26 + $0x3d8] sm:$0xff] %v292_v59 }
  0x7a   : > { %549 = vst [vmem:[%s1126_s26 + $0x3e0] sm:$0xff] %v293_v60  ;;  %550 = vst [vmem:[%s1126_s26 + $0x3e8] sm:$0xff] %v294_v61  ;;  %v295_v62 = vld [vmem:[%s1117_s5 + $0x3f0] sm:$0xff]  ;;  %v296_v63 = vld [vmem:[%s1117_s5 + $0x3f8] sm:$0xff] }
  0x7b   : > { %v297_v0 = vld [vmem:[%s1117_s5 + $0x400] sm:$0xff]  ;;  %551 = vst [vmem:[%s1126_s26 + $0x3f0] sm:$0xff] %v295_v62  ;;  %552 = vst [vmem:[%s1126_s26 + $0x3f8] sm:$0xff] %v296_v63  ;;  %v298_v1 = vld [vmem:[%s1117_s5 + $0x408] sm:$0xff] }
  0x7c   : > { %553 = vst [vmem:[%s1126_s26 + $0x400] sm:$0xff] %v297_v0  ;;  %v299_v2 = vld [vmem:[%s1117_s5 + $0x410] sm:$0xff]  ;;  %v300_v3 = vld [vmem:[%s1117_s5 + $0x418] sm:$0xff]  ;;  %554 = vst [vmem:[%s1126_s26 + $0x408] sm:$0xff] %v298_v1 }
  0x7d   : > { %555 = vst [vmem:[%s1126_s26 + $0x410] sm:$0xff] %v299_v2  ;;  %556 = vst [vmem:[%s1126_s26 + $0x418] sm:$0xff] %v300_v3  ;;  %v301_v4 = vld [vmem:[%s1117_s5 + $0x420] sm:$0xff]  ;;  %v302_v5 = vld [vmem:[%s1117_s5 + $0x428] sm:$0xff] }
  0x7e   : > { %v303_v6 = vld [vmem:[%s1117_s5 + $0x430] sm:$0xff]  ;;  %557 = vst [vmem:[%s1126_s26 + $0x420] sm:$0xff] %v301_v4  ;;  %558 = vst [vmem:[%s1126_s26 + $0x428] sm:$0xff] %v302_v5  ;;  %v304_v7 = vld [vmem:[%s1117_s5 + $0x438] sm:$0xff] }
  0x7f   : > { %559 = vst [vmem:[%s1126_s26 + $0x430] sm:$0xff] %v303_v6  ;;  %v305_v8 = vld [vmem:[%s1117_s5 + $0x440] sm:$0xff]  ;;  %v306_v9 = vld [vmem:[%s1117_s5 + $0x448] sm:$0xff]  ;;  %560 = vst [vmem:[%s1126_s26 + $0x438] sm:$0xff] %v304_v7 }
  0x80   : > { %561 = vst [vmem:[%s1126_s26 + $0x440] sm:$0xff] %v305_v8  ;;  %562 = vst [vmem:[%s1126_s26 + $0x448] sm:$0xff] %v306_v9  ;;  %v307_v10 = vld [vmem:[%s1117_s5 + $0x450] sm:$0xff]  ;;  %v308_v11 = vld [vmem:[%s1117_s5 + $0x458] sm:$0xff] }
  0x81   : > { %v309_v12 = vld [vmem:[%s1117_s5 + $0x460] sm:$0xff]  ;;  %563 = vst [vmem:[%s1126_s26 + $0x450] sm:$0xff] %v307_v10  ;;  %564 = vst [vmem:[%s1126_s26 + $0x458] sm:$0xff] %v308_v11  ;;  %v310_v13 = vld [vmem:[%s1117_s5 + $0x468] sm:$0xff] }
  0x82   : > { %565 = vst [vmem:[%s1126_s26 + $0x460] sm:$0xff] %v309_v12  ;;  %v311_v14 = vld [vmem:[%s1117_s5 + $0x470] sm:$0xff]  ;;  %v312_v15 = vld [vmem:[%s1117_s5 + $0x478] sm:$0xff]  ;;  %566 = vst [vmem:[%s1126_s26 + $0x468] sm:$0xff] %v310_v13 }
  0x83   : > { %567 = vst [vmem:[%s1126_s26 + $0x470] sm:$0xff] %v311_v14  ;;  %568 = vst [vmem:[%s1126_s26 + $0x478] sm:$0xff] %v312_v15  ;;  %v313_v16 = vld [vmem:[%s1117_s5 + $0x480] sm:$0xff]  ;;  %v314_v17 = vld [vmem:[%s1117_s5 + $0x488] sm:$0xff] }
  0x84   : > { %v315_v18 = vld [vmem:[%s1117_s5 + $0x490] sm:$0xff]  ;;  %569 = vst [vmem:[%s1126_s26 + $0x480] sm:$0xff] %v313_v16  ;;  %570 = vst [vmem:[%s1126_s26 + $0x488] sm:$0xff] %v314_v17  ;;  %v316_v19 = vld [vmem:[%s1117_s5 + $0x498] sm:$0xff] }
  0x85   : > { %571 = vst [vmem:[%s1126_s26 + $0x490] sm:$0xff] %v315_v18  ;;  %v317_v20 = vld [vmem:[%s1117_s5 + $0x4a0] sm:$0xff]  ;;  %v318_v21 = vld [vmem:[%s1117_s5 + $0x4a8] sm:$0xff]  ;;  %572 = vst [vmem:[%s1126_s26 + $0x498] sm:$0xff] %v316_v19 }
  0x86   : > { %573 = vst [vmem:[%s1126_s26 + $0x4a0] sm:$0xff] %v317_v20  ;;  %574 = vst [vmem:[%s1126_s26 + $0x4a8] sm:$0xff] %v318_v21  ;;  %v319_v22 = vld [vmem:[%s1117_s5 + $0x4b0] sm:$0xff]  ;;  %v320_v23 = vld [vmem:[%s1117_s5 + $0x4b8] sm:$0xff] }
  0x87   : > { %v321_v24 = vld [vmem:[%s1117_s5 + $0x4c0] sm:$0xff]  ;;  %575 = vst [vmem:[%s1126_s26 + $0x4b0] sm:$0xff] %v319_v22  ;;  %576 = vst [vmem:[%s1126_s26 + $0x4b8] sm:$0xff] %v320_v23  ;;  %v322_v25 = vld [vmem:[%s1117_s5 + $0x4c8] sm:$0xff] }
  0x88   : > { %577 = vst [vmem:[%s1126_s26 + $0x4c0] sm:$0xff] %v321_v24  ;;  %v323_v26 = vld [vmem:[%s1117_s5 + $0x4d0] sm:$0xff]  ;;  %v324_v27 = vld [vmem:[%s1117_s5 + $0x4d8] sm:$0xff]  ;;  %578 = vst [vmem:[%s1126_s26 + $0x4c8] sm:$0xff] %v322_v25 }
  0x89   : > { %579 = vst [vmem:[%s1126_s26 + $0x4d0] sm:$0xff] %v323_v26  ;;  %580 = vst [vmem:[%s1126_s26 + $0x4d8] sm:$0xff] %v324_v27  ;;  %v325_v28 = vld [vmem:[%s1117_s5 + $0x4e0] sm:$0xff]  ;;  %v326_v29 = vld [vmem:[%s1117_s5 + $0x4e8] sm:$0xff] }
  0x8a   : > { %v327_v30 = vld [vmem:[%s1117_s5 + $0x4f0] sm:$0xff]  ;;  %581 = vst [vmem:[%s1126_s26 + $0x4e0] sm:$0xff] %v325_v28  ;;  %582 = vst [vmem:[%s1126_s26 + $0x4e8] sm:$0xff] %v326_v29  ;;  %v328_v31 = vld [vmem:[%s1117_s5 + $0x4f8] sm:$0xff] }
  0x8b   : > { %583 = vst [vmem:[%s1126_s26 + $0x4f0] sm:$0xff] %v327_v30  ;;  %v329_v32 = vld [vmem:[%s1117_s5 + $0x500] sm:$0xff]  ;;  %v330_v33 = vld [vmem:[%s1117_s5 + $0x508] sm:$0xff]  ;;  %584 = vst [vmem:[%s1126_s26 + $0x4f8] sm:$0xff] %v328_v31 }
  0x8c   : > { %585 = vst [vmem:[%s1126_s26 + $0x500] sm:$0xff] %v329_v32  ;;  %586 = vst [vmem:[%s1126_s26 + $0x508] sm:$0xff] %v330_v33  ;;  %v331_v34 = vld [vmem:[%s1117_s5 + $0x510] sm:$0xff]  ;;  %v332_v35 = vld [vmem:[%s1117_s5 + $0x518] sm:$0xff] }
  0x8d   : > { %v333_v36 = vld [vmem:[%s1117_s5 + $0x520] sm:$0xff]  ;;  %587 = vst [vmem:[%s1126_s26 + $0x510] sm:$0xff] %v331_v34  ;;  %588 = vst [vmem:[%s1126_s26 + $0x518] sm:$0xff] %v332_v35  ;;  %v334_v37 = vld [vmem:[%s1117_s5 + $0x528] sm:$0xff] }
  0x8e   : > { %589 = vst [vmem:[%s1126_s26 + $0x520] sm:$0xff] %v333_v36  ;;  %v335_v38 = vld [vmem:[%s1117_s5 + $0x530] sm:$0xff]  ;;  %v336_v39 = vld [vmem:[%s1117_s5 + $0x538] sm:$0xff]  ;;  %590 = vst [vmem:[%s1126_s26 + $0x528] sm:$0xff] %v334_v37 }
  0x8f   : > { %591 = vst [vmem:[%s1126_s26 + $0x530] sm:$0xff] %v335_v38  ;;  %592 = vst [vmem:[%s1126_s26 + $0x538] sm:$0xff] %v336_v39  ;;  %v337_v40 = vld [vmem:[%s1117_s5 + $0x540] sm:$0xff]  ;;  %v338_v41 = vld [vmem:[%s1117_s5 + $0x548] sm:$0xff] }
  0x90   : > { %v339_v42 = vld [vmem:[%s1117_s5 + $0x550] sm:$0xff]  ;;  %593 = vst [vmem:[%s1126_s26 + $0x540] sm:$0xff] %v337_v40  ;;  %594 = vst [vmem:[%s1126_s26 + $0x548] sm:$0xff] %v338_v41  ;;  %v340_v43 = vld [vmem:[%s1117_s5 + $0x558] sm:$0xff] }
  0x91   : > { %595 = vst [vmem:[%s1126_s26 + $0x550] sm:$0xff] %v339_v42  ;;  %v341_v44 = vld [vmem:[%s1117_s5 + $0x560] sm:$0xff]  ;;  %v342_v45 = vld [vmem:[%s1117_s5 + $0x568] sm:$0xff]  ;;  %596 = vst [vmem:[%s1126_s26 + $0x558] sm:$0xff] %v340_v43 }
  0x92   : > { %597 = vst [vmem:[%s1126_s26 + $0x560] sm:$0xff] %v341_v44  ;;  %598 = vst [vmem:[%s1126_s26 + $0x568] sm:$0xff] %v342_v45  ;;  %v343_v46 = vld [vmem:[%s1117_s5 + $0x570] sm:$0xff]  ;;  %v344_v47 = vld [vmem:[%s1117_s5 + $0x578] sm:$0xff] }
  0x93   : > { %v345_v48 = vld [vmem:[%s1117_s5 + $0x580] sm:$0xff]  ;;  %599 = vst [vmem:[%s1126_s26 + $0x570] sm:$0xff] %v343_v46  ;;  %600 = vst [vmem:[%s1126_s26 + $0x578] sm:$0xff] %v344_v47  ;;  %v346_v49 = vld [vmem:[%s1117_s5 + $0x588] sm:$0xff] }
  0x94   : > { %601 = vst [vmem:[%s1126_s26 + $0x580] sm:$0xff] %v345_v48  ;;  %v347_v50 = vld [vmem:[%s1117_s5 + $0x590] sm:$0xff]  ;;  %v348_v51 = vld [vmem:[%s1117_s5 + $0x598] sm:$0xff]  ;;  %602 = vst [vmem:[%s1126_s26 + $0x588] sm:$0xff] %v346_v49 }
  0x95   : > { %603 = vst [vmem:[%s1126_s26 + $0x590] sm:$0xff] %v347_v50  ;;  %604 = vst [vmem:[%s1126_s26 + $0x598] sm:$0xff] %v348_v51  ;;  %v349_v52 = vld [vmem:[%s1117_s5 + $0x5a0] sm:$0xff]  ;;  %v350_v53 = vld [vmem:[%s1117_s5 + $0x5a8] sm:$0xff] }
  0x96   : > { %v351_v54 = vld [vmem:[%s1117_s5 + $0x5b0] sm:$0xff]  ;;  %605 = vst [vmem:[%s1126_s26 + $0x5a0] sm:$0xff] %v349_v52  ;;  %606 = vst [vmem:[%s1126_s26 + $0x5a8] sm:$0xff] %v350_v53  ;;  %v352_v55 = vld [vmem:[%s1117_s5 + $0x5b8] sm:$0xff] }
  0x97   : > { %607 = vst [vmem:[%s1126_s26 + $0x5b0] sm:$0xff] %v351_v54  ;;  %v353_v56 = vld [vmem:[%s1117_s5 + $0x5c0] sm:$0xff]  ;;  %v354_v57 = vld [vmem:[%s1117_s5 + $0x5c8] sm:$0xff]  ;;  %608 = vst [vmem:[%s1126_s26 + $0x5b8] sm:$0xff] %v352_v55 }
  0x98   : > { %609 = vst [vmem:[%s1126_s26 + $0x5c0] sm:$0xff] %v353_v56  ;;  %610 = vst [vmem:[%s1126_s26 + $0x5c8] sm:$0xff] %v354_v57  ;;  %v355_v58 = vld [vmem:[%s1117_s5 + $0x5d0] sm:$0xff]  ;;  %v356_v59 = vld [vmem:[%s1117_s5 + $0x5d8] sm:$0xff] }
  0x99   : > { %v357_v60 = vld [vmem:[%s1117_s5 + $0x5e0] sm:$0xff]  ;;  %611 = vst [vmem:[%s1126_s26 + $0x5d0] sm:$0xff] %v355_v58  ;;  %612 = vst [vmem:[%s1126_s26 + $0x5d8] sm:$0xff] %v356_v59  ;;  %v358_v61 = vld [vmem:[%s1117_s5 + $0x5e8] sm:$0xff] }
  0x9a   : > { %613 = vst [vmem:[%s1126_s26 + $0x5e0] sm:$0xff] %v357_v60  ;;  %v359_v62 = vld [vmem:[%s1117_s5 + $0x5f0] sm:$0xff]  ;;  %v360_v63 = vld [vmem:[%s1117_s5 + $0x5f8] sm:$0xff]  ;;  %614 = vst [vmem:[%s1126_s26 + $0x5e8] sm:$0xff] %v358_v61 }
  0x9b   : > { %615 = vst [vmem:[%s1126_s26 + $0x5f0] sm:$0xff] %v359_v62  ;;  %616 = vst [vmem:[%s1126_s26 + $0x5f8] sm:$0xff] %v360_v63  ;;  %v361_v0 = vld [vmem:[%s1117_s5 + $0x600] sm:$0xff]  ;;  %v362_v1 = vld [vmem:[%s1117_s5 + $0x608] sm:$0xff] }
  0x9c   : > { %v363_v2 = vld [vmem:[%s1117_s5 + $0x610] sm:$0xff]  ;;  %617 = vst [vmem:[%s1126_s26 + $0x600] sm:$0xff] %v361_v0  ;;  %618 = vst [vmem:[%s1126_s26 + $0x608] sm:$0xff] %v362_v1  ;;  %v364_v3 = vld [vmem:[%s1117_s5 + $0x618] sm:$0xff] }
  0x9d   : > { %619 = vst [vmem:[%s1126_s26 + $0x610] sm:$0xff] %v363_v2  ;;  %v365_v4 = vld [vmem:[%s1117_s5 + $0x620] sm:$0xff]  ;;  %v366_v5 = vld [vmem:[%s1117_s5 + $0x628] sm:$0xff]  ;;  %620 = vst [vmem:[%s1126_s26 + $0x618] sm:$0xff] %v364_v3 }
  0x9e   : > { %621 = vst [vmem:[%s1126_s26 + $0x620] sm:$0xff] %v365_v4  ;;  %622 = vst [vmem:[%s1126_s26 + $0x628] sm:$0xff] %v366_v5  ;;  %v367_v6 = vld [vmem:[%s1117_s5 + $0x630] sm:$0xff]  ;;  %v368_v7 = vld [vmem:[%s1117_s5 + $0x638] sm:$0xff] }
  0x9f   : > { %v369_v8 = vld [vmem:[%s1117_s5 + $0x640] sm:$0xff]  ;;  %623 = vst [vmem:[%s1126_s26 + $0x630] sm:$0xff] %v367_v6  ;;  %624 = vst [vmem:[%s1126_s26 + $0x638] sm:$0xff] %v368_v7  ;;  %v370_v9 = vld [vmem:[%s1117_s5 + $0x648] sm:$0xff] }
  0xa0   : > { %625 = vst [vmem:[%s1126_s26 + $0x640] sm:$0xff] %v369_v8  ;;  %v371_v10 = vld [vmem:[%s1117_s5 + $0x650] sm:$0xff]  ;;  %v372_v11 = vld [vmem:[%s1117_s5 + $0x658] sm:$0xff]  ;;  %626 = vst [vmem:[%s1126_s26 + $0x648] sm:$0xff] %v370_v9 }
  0xa1   : > { %627 = vst [vmem:[%s1126_s26 + $0x650] sm:$0xff] %v371_v10  ;;  %628 = vst [vmem:[%s1126_s26 + $0x658] sm:$0xff] %v372_v11  ;;  %v373_v12 = vld [vmem:[%s1117_s5 + $0x660] sm:$0xff]  ;;  %v374_v13 = vld [vmem:[%s1117_s5 + $0x668] sm:$0xff] }
  0xa2   : > { %v375_v14 = vld [vmem:[%s1117_s5 + $0x670] sm:$0xff]  ;;  %629 = vst [vmem:[%s1126_s26 + $0x660] sm:$0xff] %v373_v12  ;;  %630 = vst [vmem:[%s1126_s26 + $0x668] sm:$0xff] %v374_v13  ;;  %v376_v15 = vld [vmem:[%s1117_s5 + $0x678] sm:$0xff] }
  0xa3   : > { %631 = vst [vmem:[%s1126_s26 + $0x670] sm:$0xff] %v375_v14  ;;  %v377_v16 = vld [vmem:[%s1117_s5 + $0x680] sm:$0xff]  ;;  %v378_v17 = vld [vmem:[%s1117_s5 + $0x688] sm:$0xff]  ;;  %632 = vst [vmem:[%s1126_s26 + $0x678] sm:$0xff] %v376_v15 }
  0xa4   : > { %633 = vst [vmem:[%s1126_s26 + $0x680] sm:$0xff] %v377_v16  ;;  %634 = vst [vmem:[%s1126_s26 + $0x688] sm:$0xff] %v378_v17  ;;  %v379_v18 = vld [vmem:[%s1117_s5 + $0x690] sm:$0xff]  ;;  %v380_v19 = vld [vmem:[%s1117_s5 + $0x698] sm:$0xff] }
  0xa5   : > { %v381_v20 = vld [vmem:[%s1117_s5 + $0x6a0] sm:$0xff]  ;;  %635 = vst [vmem:[%s1126_s26 + $0x690] sm:$0xff] %v379_v18  ;;  %636 = vst [vmem:[%s1126_s26 + $0x698] sm:$0xff] %v380_v19  ;;  %v382_v21 = vld [vmem:[%s1117_s5 + $0x6a8] sm:$0xff] }
  0xa6   : > { %637 = vst [vmem:[%s1126_s26 + $0x6a0] sm:$0xff] %v381_v20  ;;  %v383_v22 = vld [vmem:[%s1117_s5 + $0x6b0] sm:$0xff]  ;;  %v384_v23 = vld [vmem:[%s1117_s5 + $0x6b8] sm:$0xff]  ;;  %638 = vst [vmem:[%s1126_s26 + $0x6a8] sm:$0xff] %v382_v21 }
  0xa7   : > { %639 = vst [vmem:[%s1126_s26 + $0x6b0] sm:$0xff] %v383_v22  ;;  %640 = vst [vmem:[%s1126_s26 + $0x6b8] sm:$0xff] %v384_v23  ;;  %v385_v24 = vld [vmem:[%s1117_s5 + $0x6c0] sm:$0xff]  ;;  %v386_v25 = vld [vmem:[%s1117_s5 + $0x6c8] sm:$0xff] }
  0xa8   : > { %v387_v26 = vld [vmem:[%s1117_s5 + $0x6d0] sm:$0xff]  ;;  %641 = vst [vmem:[%s1126_s26 + $0x6c0] sm:$0xff] %v385_v24  ;;  %642 = vst [vmem:[%s1126_s26 + $0x6c8] sm:$0xff] %v386_v25  ;;  %v388_v27 = vld [vmem:[%s1117_s5 + $0x6d8] sm:$0xff] }
  0xa9   : > { %643 = vst [vmem:[%s1126_s26 + $0x6d0] sm:$0xff] %v387_v26  ;;  %v389_v28 = vld [vmem:[%s1117_s5 + $0x6e0] sm:$0xff]  ;;  %v390_v29 = vld [vmem:[%s1117_s5 + $0x6e8] sm:$0xff]  ;;  %644 = vst [vmem:[%s1126_s26 + $0x6d8] sm:$0xff] %v388_v27 }
  0xaa   : > { %645 = vst [vmem:[%s1126_s26 + $0x6e0] sm:$0xff] %v389_v28  ;;  %646 = vst [vmem:[%s1126_s26 + $0x6e8] sm:$0xff] %v390_v29  ;;  %v391_v30 = vld [vmem:[%s1117_s5 + $0x6f0] sm:$0xff]  ;;  %v392_v31 = vld [vmem:[%s1117_s5 + $0x6f8] sm:$0xff] }
  0xab   : > { %v393_v32 = vld [vmem:[%s1117_s5 + $0x700] sm:$0xff]  ;;  %647 = vst [vmem:[%s1126_s26 + $0x6f0] sm:$0xff] %v391_v30  ;;  %648 = vst [vmem:[%s1126_s26 + $0x6f8] sm:$0xff] %v392_v31  ;;  %v394_v33 = vld [vmem:[%s1117_s5 + $0x708] sm:$0xff] }
  0xac   : > { %649 = vst [vmem:[%s1126_s26 + $0x700] sm:$0xff] %v393_v32  ;;  %v395_v34 = vld [vmem:[%s1117_s5 + $0x710] sm:$0xff]  ;;  %v396_v35 = vld [vmem:[%s1117_s5 + $0x718] sm:$0xff]  ;;  %650 = vst [vmem:[%s1126_s26 + $0x708] sm:$0xff] %v394_v33 }
  0xad   : > { %651 = vst [vmem:[%s1126_s26 + $0x710] sm:$0xff] %v395_v34  ;;  %652 = vst [vmem:[%s1126_s26 + $0x718] sm:$0xff] %v396_v35  ;;  %v397_v36 = vld [vmem:[%s1117_s5 + $0x720] sm:$0xff]  ;;  %v398_v37 = vld [vmem:[%s1117_s5 + $0x728] sm:$0xff] }
  0xae   : > { %v399_v38 = vld [vmem:[%s1117_s5 + $0x730] sm:$0xff]  ;;  %653 = vst [vmem:[%s1126_s26 + $0x720] sm:$0xff] %v397_v36  ;;  %654 = vst [vmem:[%s1126_s26 + $0x728] sm:$0xff] %v398_v37  ;;  %v400_v39 = vld [vmem:[%s1117_s5 + $0x738] sm:$0xff] }
  0xaf   : > { %655 = vst [vmem:[%s1126_s26 + $0x730] sm:$0xff] %v399_v38  ;;  %v401_v40 = vld [vmem:[%s1117_s5 + $0x740] sm:$0xff]  ;;  %v402_v41 = vld [vmem:[%s1117_s5 + $0x748] sm:$0xff]  ;;  %656 = vst [vmem:[%s1126_s26 + $0x738] sm:$0xff] %v400_v39 }
  0xb0   : > { %657 = vst [vmem:[%s1126_s26 + $0x740] sm:$0xff] %v401_v40  ;;  %658 = vst [vmem:[%s1126_s26 + $0x748] sm:$0xff] %v402_v41  ;;  %v403_v42 = vld [vmem:[%s1117_s5 + $0x750] sm:$0xff]  ;;  %v404_v43 = vld [vmem:[%s1117_s5 + $0x758] sm:$0xff] }
  0xb1   : > { %v405_v44 = vld [vmem:[%s1117_s5 + $0x760] sm:$0xff]  ;;  %659 = vst [vmem:[%s1126_s26 + $0x750] sm:$0xff] %v403_v42  ;;  %660 = vst [vmem:[%s1126_s26 + $0x758] sm:$0xff] %v404_v43  ;;  %v406_v45 = vld [vmem:[%s1117_s5 + $0x768] sm:$0xff] }
  0xb2   : > { %661 = vst [vmem:[%s1126_s26 + $0x760] sm:$0xff] %v405_v44  ;;  %v407_v46 = vld [vmem:[%s1117_s5 + $0x770] sm:$0xff]  ;;  %v408_v47 = vld [vmem:[%s1117_s5 + $0x778] sm:$0xff]  ;;  %662 = vst [vmem:[%s1126_s26 + $0x768] sm:$0xff] %v406_v45 }
  0xb3   : > { %663 = vst [vmem:[%s1126_s26 + $0x770] sm:$0xff] %v407_v46  ;;  %664 = vst [vmem:[%s1126_s26 + $0x778] sm:$0xff] %v408_v47  ;;  %v409_v48 = vld [vmem:[%s1117_s5 + $0x780] sm:$0xff]  ;;  %v410_v49 = vld [vmem:[%s1117_s5 + $0x788] sm:$0xff] }
  0xb4   : > { %v411_v50 = vld [vmem:[%s1117_s5 + $0x790] sm:$0xff]  ;;  %665 = vst [vmem:[%s1126_s26 + $0x780] sm:$0xff] %v409_v48  ;;  %666 = vst [vmem:[%s1126_s26 + $0x788] sm:$0xff] %v410_v49  ;;  %v412_v51 = vld [vmem:[%s1117_s5 + $0x798] sm:$0xff] }
  0xb5   : > { %667 = vst [vmem:[%s1126_s26 + $0x790] sm:$0xff] %v411_v50  ;;  %v413_v52 = vld [vmem:[%s1117_s5 + $0x7a0] sm:$0xff]  ;;  %v414_v53 = vld [vmem:[%s1117_s5 + $0x7a8] sm:$0xff]  ;;  %668 = vst [vmem:[%s1126_s26 + $0x798] sm:$0xff] %v412_v51 }
  0xb6   : > { %669 = vst [vmem:[%s1126_s26 + $0x7a0] sm:$0xff] %v413_v52  ;;  %670 = vst [vmem:[%s1126_s26 + $0x7a8] sm:$0xff] %v414_v53  ;;  %v415_v54 = vld [vmem:[%s1117_s5 + $0x7b0] sm:$0xff]  ;;  %v416_v55 = vld [vmem:[%s1117_s5 + $0x7b8] sm:$0xff] }
  0xb7   : > { %v417_v56 = vld [vmem:[%s1117_s5 + $0x7c0] sm:$0xff]  ;;  %671 = vst [vmem:[%s1126_s26 + $0x7b0] sm:$0xff] %v415_v54  ;;  %672 = vst [vmem:[%s1126_s26 + $0x7b8] sm:$0xff] %v416_v55  ;;  %v418_v57 = vld [vmem:[%s1117_s5 + $0x7c8] sm:$0xff] }
  0xb8   : > { %673 = vst [vmem:[%s1126_s26 + $0x7c0] sm:$0xff] %v417_v56  ;;  %v419_v58 = vld [vmem:[%s1117_s5 + $0x7d0] sm:$0xff]  ;;  %v420_v59 = vld [vmem:[%s1117_s5 + $0x7d8] sm:$0xff]  ;;  %674 = vst [vmem:[%s1126_s26 + $0x7c8] sm:$0xff] %v418_v57 }
  0xb9   : > { %675 = vst [vmem:[%s1126_s26 + $0x7d0] sm:$0xff] %v419_v58  ;;  %676 = vst [vmem:[%s1126_s26 + $0x7d8] sm:$0xff] %v420_v59  ;;  %v421_v60 = vld [vmem:[%s1117_s5 + $0x7e0] sm:$0xff]  ;;  %v422_v61 = vld [vmem:[%s1117_s5 + $0x7e8] sm:$0xff] }
  0xba   : > { %v423_v62 = vld [vmem:[%s1117_s5 + $0x7f0] sm:$0xff]  ;;  %677 = vst [vmem:[%s1126_s26 + $0x7e0] sm:$0xff] %v421_v60  ;;  %678 = vst [vmem:[%s1126_s26 + $0x7e8] sm:$0xff] %v422_v61  ;;  %v424_v63 = vld [vmem:[%s1117_s5 + $0x7f8] sm:$0xff] }
  0xbb   : > { %679 = vst [vmem:[%s1126_s26 + $0x7f0] sm:$0xff] %v423_v62  ;;  %680 = vst [vmem:[%s1126_s26 + $0x7f8] sm:$0xff] %v424_v63 }
  0xbc   : > { %915 = shalt.err (!%p912_p3)
}
  0xbd   : > { %s916_s22 = scalar_lea.hbm %s1631_s2, 32768  ;;  %s920_s25 = scalar_lea.hbm %s1694_s1, 65536 }
  0xbe   : > { %p917_p5 = scmp.ne.s32.totalorder %s1631_s2, %s916_s22  ;;  %p921_p12 = scmp.lt.u32.totalorder %s1631_s2, %s1694_s1 }
  0xbf   : > { %p922_p2 = scmp.lt.u32.totalorder %s920_s25, %s916_s22  ;;  %p924_p8 = scmp.lt.u32.totalorder %s916_s22, %s1631_s2 }
  0xc0   : > { %p918_p6 = pnand %p917_p5, %p1701_p9 }
  0xc1   : > { %p923_p4 = por %p922_p2, %p921_p12 }
  0xc2   : > { %p919_p7 = pneg %p918_p6 }
  0xc3   : > { %p925_p11 = por %p924_p8, %p923_p4 }
  0xc5   : > { %p926_p0 = pnand %p925_p11, %p919_p7 }
  0xc7   : > { %929 = shalt.err (!%p926_p0)
}
  0xc8   : > { %s991_s4 = smov 1024   ;;  %s992_s5 = smov 64  }
  0xc9   : > { %807 = dma.vmem_to_hbm [thread:$0]  (%p1701_p9), %s1633_s27, 32768, %s1631_s2, %s682_s12, %s991_s4, %s991_s4, %s992_s5  }
  0xca PF: > { %s713_s26 = sand.u32 1, %s964_s6   ;;  %p1702_p10 = scmp.ne.s32.totalorder %s1699_s21, 0 }
  0xcb   : > { %p1703_p13 = scmp.ge.s32.totalorder %s984_s11, 2  ;;  %s714_s18 = scalar_lea.sflag [#allocation4], %s713_s26 }
  0xcd   : > { %p814_p1 = pnand %p1703_p13, %p1702_p10 }
  0xcf   : > { %959 = dma.done.wait (!%p814_p1), %s714_s18, 32768  }
  0xd0   : > { %961 = vsyncadd (!%p814_p1), %s714_s18, 4294934528  ;;  %s17_s11 = sadd.s32 1, %s984_s11   ;;  %s1704_s6 = smov %s968_s7 }
  0xd1   : > { %p14_p3 = scmp.ge.s32.totalorder %s17_s11, 4   ;;  %s1705_s7 = smov %s972_s8 }
  0xd2   : > { %s1706_s8 = smov %s1059_s20  ;;  %s1707_s9 = smov %s980_s10 }
  0xd3   : > { %s1708_s10 = smov %s1710_s14  ;;  %16 = sbr.rel (!%p14_p3) target bundleno = 6 (0x6), region = 69 }
  0xda   :  { %719 = vsyncpa [#allocation3], 1 }
  0xdb   :  { %721 = vsyncpa [#allocation3 + $0x1], 1 }
  0xdc   :  { %722 = vsyncpa [#allocation4], 1 }
  0xdd   :  { %724 = vsyncpa [#allocation4 + $0x1], 1 }

</bundles_post_ra>
